<compile_context>
chip_gen: v7x
topology: tpu7x:2x2x1
jax: 0.10.0
libtpu: 0.0.40
codegen_flags: <defaults>
</compile_context>

<pallas_src>
import functools

import jax
import jax.numpy as jnp
from jax.experimental import pallas as pl
from jax.experimental.pallas import tpu as pltpu


def _layernorm_kernel(x_ref, w_ref, b_ref, o_ref, *, eps, inv_hidden):
    # x_ref: (tile_rows, H) block; w_ref/b_ref: (1, H) resident blocks.
    x = x_ref[...].astype(jnp.float32)
    w = w_ref[...].astype(jnp.float32)          # hoisted once per grid step
    b = b_ref[...].astype(jnp.float32)

    u = jnp.sum(x, axis=-1, keepdims=True) * inv_hidden        # row mean
    xc = x - u
    s = jnp.sum(xc * xc, axis=-1, keepdims=True) * inv_hidden  # biased variance
    inv = jax.lax.rsqrt(s + eps)                                # eps inside sqrt (TF style)
    o_ref[...] = (w * (xc * inv) + b).astype(o_ref.dtype)


def _round_up(n, m):
    return ((n + m - 1) // m) * m


def _pick_tile_rows(rows, hidden, in_itemsize, out_itemsize):
    # Double-buffered (input + output) block bytes must fit the budget.
    block_budget_bytes = 16 * 1024 * 1024
    bytes_per_row = 2 * hidden * (in_itemsize + out_itemsize)
    tile_rows = block_budget_bytes // max(bytes_per_row, 1)
    tile_rows = max(8, (tile_rows // 8) * 8)      # sublane-aligned
    tile_rows = min(tile_rows, 1024)              # bound vreg/VMEM pressure
    # No point tiling beyond the (8-rounded) row count.
    tile_rows = min(tile_rows, _round_up(rows, 8))
    return max(8, (tile_rows // 8) * 8)


def layer_norm(x, weight, bias, eps=1e-12, tile_rows=None):
    """LayerNorm over the last axis of x (any leading shape)."""
    orig_shape = x.shape
    hidden = orig_shape[-1]
    rows = 1
    for d in orig_shape[:-1]:
        rows *= d

    x2 = x.reshape(rows, hidden)
    w2 = weight.reshape(1, hidden)
    b2 = bias.reshape(1, hidden)

    if tile_rows is None:
        tile_rows = _pick_tile_rows(
            rows, hidden, x2.dtype.itemsize, x2.dtype.itemsize
        )

    # Ragged last block handled by Pallas (no wrapper-side pad/concat/slice).
    grid = (pl.cdiv(rows, tile_rows),)

    kernel = functools.partial(
        _layernorm_kernel, eps=float(eps), inv_hidden=1.0 / float(hidden)
    )

    # NOTE: hidden < 128 (as in the small test) leaves lanes idle; production
    # layouts should keep hidden a multiple of 128 for lane-dense stores.
    out = pl.pallas_call(
        kernel,
        out_shape=jax.ShapeDtypeStruct((rows, hidden), x.dtype),
        grid_spec=pltpu.PrefetchScalarGridSpec(
            num_scalar_prefetch=0,
            grid=grid,
            in_specs=[
                pl.BlockSpec((tile_rows, hidden), lambda i: (i, 0)),
                pl.BlockSpec((1, hidden), lambda i: (0, 0)),
                pl.BlockSpec((1, hidden), lambda i: (0, 0)),
            ],
            out_specs=pl.BlockSpec((tile_rows, hidden), lambda i: (i, 0)),
        ),
        compiler_params=pltpu.CompilerParams(
            dimension_semantics=("parallel",),
            vmem_limit_bytes=48 * 1024 * 1024,
        ),
    )(x2, w2, b2)

    return out.reshape(orig_shape)


if __name__ == "__main__":
    key = jax.random.PRNGKey(0)
    batch, seq, hidden = 2, 8, 32
    x = jax.random.normal(key, (batch, seq, hidden), dtype=jnp.float32)

    # Deterministic parameter init matching nn.Parameter(torch.ones/zeros(hidden)).
    weight = jnp.ones((hidden,), dtype=jnp.float32)
    bias = jnp.zeros((hidden,), dtype=jnp.float32)
    eps = 1e-12  # TF-style default from the reference module

    y = layer_norm(x, weight, bias, eps)
    jax.block_until_ready(y)

    # Reference check in plain JAX (same math as the PyTorch forward).
    u = jnp.mean(x, axis=-1, keepdims=True)
    s = jnp.mean((x - u) ** 2, axis=-1, keepdims=True)
    ref = weight * ((x - u) / jnp.sqrt(s + eps)) + bias
    assert jnp.allclose(y, ref, atol=1e-5, rtol=1e-5), "mismatch vs reference"

    print("KERNEL_OK")
</pallas_src>

<mosaic_0001>
module attributes {stable_mosaic.version = 11 : i64} {
  func.func @_layernorm_kernel(%arg0: i32, %arg1: memref<16x32xf32, #tpu.memory_space<vmem>>, %arg2: memref<1x32xf32, #tpu.memory_space<vmem>>, %arg3: memref<1x32xf32, #tpu.memory_space<vmem>>, %arg4: memref<16x32xf32, #tpu.memory_space<vmem>>) attributes {dimension_semantics = [#tpu.dimension_semantics<parallel>], iteration_bounds = array<i64: 1>, scalar_prefetch = 0 : i64, scratch_operands = 0 : i64, tpu.core_type = #tpu.core_type<tc>, window_params = [{transform_indices = @transform_0, window_bounds = array<i64: 16, 32>}, {pipeline_mode = #tpu.pipeline_mode<synchronous>, transform_indices = @transform_1, window_bounds = array<i64: 1, 32>}, {pipeline_mode = #tpu.pipeline_mode<synchronous>, transform_indices = @transform_2, window_bounds = array<i64: 1, 32>}, {transform_indices = @transform_3, window_bounds = array<i64: 16, 32>}]} {
    %c0 = arith.constant 0 : index
    %c0_0 = arith.constant 0 : index
    %0 = vector.load %arg1[%c0, %c0_0] : memref<16x32xf32, #tpu.memory_space<vmem>>, vector<16x32xf32>
    %c0_1 = arith.constant 0 : index
    %c0_2 = arith.constant 0 : index
    %1 = vector.load %arg2[%c0_1, %c0_2] : memref<1x32xf32, #tpu.memory_space<vmem>>, vector<1x32xf32>
    %c0_3 = arith.constant 0 : index
    %c0_4 = arith.constant 0 : index
    %2 = vector.load %arg3[%c0_3, %c0_4] : memref<1x32xf32, #tpu.memory_space<vmem>>, vector<1x32xf32>
    %cst = arith.constant dense<0.000000e+00> : vector<16xf32>
    %3 = vector.multi_reduction <add>, %0, %cst [1] : vector<16x32xf32> to vector<16xf32>
    %4 = vector.shape_cast %3 : vector<16xf32> to vector<16x1xf32>
    %cst_5 = arith.constant 3.125000e-02 : f32
    %5 = vector.broadcast %cst_5 : f32 to vector<16x1xf32>
    %6 = arith.mulf %4, %5 : vector<16x1xf32>
    %7 = vector.broadcast %6 : vector<16x1xf32> to vector<16x32xf32>
    %8 = arith.subf %0, %7 : vector<16x32xf32>
    %9 = arith.mulf %8, %8 : vector<16x32xf32>
    %cst_6 = arith.constant dense<0.000000e+00> : vector<16xf32>
    %10 = vector.multi_reduction <add>, %9, %cst_6 [1] : vector<16x32xf32> to vector<16xf32>
    %11 = vector.shape_cast %10 : vector<16xf32> to vector<16x1xf32>
    %cst_7 = arith.constant 3.125000e-02 : f32
    %12 = vector.broadcast %cst_7 : f32 to vector<16x1xf32>
    %13 = arith.mulf %11, %12 : vector<16x1xf32>
    %cst_8 = arith.constant 9.99999996E-13 : f32
    %14 = vector.broadcast %cst_8 : f32 to vector<16x1xf32>
    %15 = arith.addf %13, %14 : vector<16x1xf32>
    %16 = math.rsqrt %15 : vector<16x1xf32>
    %17 = vector.broadcast %16 : vector<16x1xf32> to vector<16x32xf32>
    %18 = arith.mulf %8, %17 : vector<16x32xf32>
    %19 = vector.broadcast %1 : vector<1x32xf32> to vector<16x32xf32>
    %20 = arith.mulf %19, %18 : vector<16x32xf32>
    %21 = vector.broadcast %2 : vector<1x32xf32> to vector<16x32xf32>
    %22 = arith.addf %20, %21 : vector<16x32xf32>
    %c0_9 = arith.constant 0 : index
    %c0_10 = arith.constant 0 : index
    %23 = vector.load %arg4[%c0_9, %c0_10] : memref<16x32xf32, #tpu.memory_space<vmem>>, vector<16x32xf32>
    tpu.vector_store %arg4[%c0_9, %c0_10], %22 {strides = array<i32>} : memref<16x32xf32, #tpu.memory_space<vmem>>, vector<16x32xf32>,
    return
  }
  func.func @transform_0(%arg0: i32) -> (i32, i32) {
    %c0_i32 = arith.constant 0 : i32
    %c0_i32_0 = arith.constant 0 : i32
    return %arg0, %c0_i32 : i32, i32
  }
  func.func @transform_1(%arg0: i32) -> (i32, i32) {
    %c0_i32 = arith.constant 0 : i32
    %c0_i32_0 = arith.constant 0 : i32
    %c0_i32_1 = arith.constant 0 : i32
    return %c0_i32, %c0_i32_0 : i32, i32
  }
  func.func @transform_2(%arg0: i32) -> (i32, i32) {
    %c0_i32 = arith.constant 0 : i32
    %c0_i32_0 = arith.constant 0 : i32
    %c0_i32_1 = arith.constant 0 : i32
    return %c0_i32, %c0_i32_0 : i32, i32
  }
  func.func @transform_3(%arg0: i32) -> (i32, i32) {
    %c0_i32 = arith.constant 0 : i32
    %c0_i32_0 = arith.constant 0 : i32
    return %arg0, %c0_i32 : i32, i32
  }
}

</mosaic_0001>

<bundles_post_ra>
// kernel: tpu_custom_call.1
= control target key start
LH: loop header
LB: loop body
LE: loop exit
PB: predicated region body
PF: predicated region fallthrough
CT: control target
= control target key end

     0   :  { %8 = vsyncpa [#allocation3], 0  ;;  %s219_s0 = inlined_call_operand.hbm [shape: f32[16,32], index: 0, kind: input, shape index: {}]   ;;  %s220_s1 = inlined_call_operand.vmem [shape: f32[1,32], index: 1, kind: input, shape index: {}]   ;;  %s221_s2 = inlined_call_operand.vmem [shape: f32[1,32], index: 2, kind: input, shape index: {}]   ;;  %s222_s3 = inlined_call_operand.hbm [shape: f32[16,32], index: 3, kind: output, shape index: {}]  }
   0x1   :  { %9 = vsyncpa [#allocation4], 0  ;;  %s153_s12 = smov [#allocation2]   ;;  %s105_s16 = scalar_lea.hbm %s219_s0, 256 }
   0x2   :  { %s15_s13 = sshll.u32 %s153_s12, 4  ;;  %p106_p0 = scmp.ne.s32.totalorder %s219_s0, %s105_s16  ;;  %s16_s13 = int_to_ptr.vmem [resolvable:$true] %s15_s13 }
   0x3   :  { %p109_p1 = scmp.lt.u32.totalorder %s105_s16, %s219_s0 }
   0x5   :  { %p111_p2 = pnand %p109_p1, %p106_p0 }
   0x7   :  { %114 = shalt.err (!%p111_p2)
}
   0x8   :  { %s115_s21 = scalar_lea.vmem %s16_s13, 256  ;;  %p120_p4 = scmp.lt.s32.totalorder %s16_s13, %s16_s13 }
   0x9   :  { %p116_p3 = scmp.ne.s32.totalorder %s16_s13, %s115_s21  ;;  %p121_p5 = scmp.lt.s32.totalorder %s115_s21, %s115_s21 }
   0xb   :  { %p122_p6 = por %p121_p5, %p120_p4 }
   0xd   :  { %p123_p7 = pnand %p122_p6, %p116_p3 }
   0xf   :  { %126 = shalt.err (!%p123_p7)
}
  0x10   :  { %s154_s22 = smov 128   ;;  %s155_s23 = smov 8  }
  0x11   :  { %21 = dma.hbm_to_vmem [thread:$0]  %s219_s0, 256, %s16_s13, [#allocation3], %s154_s22, %s154_s22, %s155_s23  }
  0x12   :  { %149 = dma.done.wait [#allocation3], 256  }
  0x13   :  { %150 = vsyncadd [#allocation3], 4294967040  ;;  %vm33_vm0 = vcmask 261120   ;;  %v29_v0 = vld [vmem:[#allocation2] sm:$0xff]  ;;  %v30_v1 = vld [vmem:[#allocation2 + $0x8] sm:$0xff]  ;;  %s156_s29 = smov [#allocation5]  }
  0x14   :  { %v34_v2 = vsel %vm33_vm0, %v29_v0, 0.0  ;;  %v37_v3 = vsel %vm33_vm0, %v30_v1, 0.0  ;;  %v95_v21 = vld [vmem:[%s220_s1] ss:$0 sm:$0xff]  ;;  %s83_s30 = sshll.u32 %s156_s29, 4  ;;  %s84_s30 = int_to_ptr.vmem [resolvable:$true] %s83_s30 }
  0x15   :  { %35 = vadd.xlane.f32.xlu0 %v34_v2  ;;  %v96_v23 = vld [vmem:[%s221_s2] ss:$0 sm:$0xff]  ;;  %s127_s4 = scalar_lea.vmem %s84_s30, 256  ;;  %p132_p9 = scmp.lt.s32.totalorder %s84_s30, %s84_s30 }
  0x16   :  { %p128_p8 = scmp.ne.s32.totalorder %s84_s30, %s127_s4  ;;  %p133_p10 = scmp.lt.s32.totalorder %s127_s4, %s127_s4 }
  0x18   :  { %p134_p11 = por %p133_p10, %p132_p9 }
  0x19   :  { %38 = vadd.xlane.f32.xlu0 %v37_v3 }
  0x1a   :  { %p135_p12 = pnand %p134_p11, %p128_p8 }
  0xa2   :  { %v36_v4 = vpop.xlane.xlu0 %35 }
  0xa3   :  { %v40_v5 = vmul.f32 0.03125, %v36_v4 }
  0xa5   :  { %v42_v6 = vsub.f32 %v29_v0, %v40_v5 }
  0xa6   :  { %v39_v7 = vpop.xlane.xlu0 %38 }
  0xa7   :  { %v41_v8 = vmul.f32 0.03125, %v39_v7  ;;  %v44_v9 = vmul.f32 %v42_v6, %v42_v6 }
  0xa9   :  { %v43_v10 = vsub.f32 %v30_v1, %v41_v8  ;;  %v46_v11 = vsel %vm33_vm0, %v44_v9, 0.0 }
  0xaa   :  { %47 = vadd.xlane.f32.xlu1 %v46_v11 }
  0xab   :  { %v45_v12 = vmul.f32 %v43_v10, %v43_v10 }
  0xad   :  { %v49_v13 = vsel %vm33_vm0, %v45_v12, 0.0 }
  0xae   :  { %50 = vadd.xlane.f32.xlu1 %v49_v13 }
 0x137   :  { %v48_v14 = vpop.xlane.xlu1 %47 }
 0x138   :  { %v52_v15 = vmul.f32 0.03125, %v48_v14 }
 0x13a   :  { %v54_v16 = vadd.f32 1e-12, %v52_v15 }
 0x13b   :  { %v51_v17 = vpop.xlane.xlu1 %50 }
 0x13c   :  { %101 = vrsqrt.f32 %v54_v16  ;;  %v53_v18 = vmul.f32 0.03125, %v51_v17 }
 0x13e   :  { %v55_v19 = vadd.f32 1e-12, %v53_v18 }
 0x140   :  { %103 = vrsqrt.f32 %v55_v19 }
 0x146   :  { %v102_v20 = vpop.eup %101 }
 0x147   :  { %v58_v22 = vmul.f32 %v102_v20, %v42_v6 }
 0x149   :  { %v66_v24 = vmul.f32 %v95_v21, %v58_v22 }
 0x14a   :  { %v104_v25 = vpop.eup %103 }
 0x14b   :  { %v59_v26 = vmul.f32 %v104_v25, %v43_v10  ;;  %v74_v27 = vadd.f32 %v96_v23, %v66_v24 }
 0x14d   :  { %v67_v28 = vmul.f32 %v95_v21, %v59_v26  ;;  %76 = vst.msk [vmem:[#allocation5] sm:$0xff] %vm33_vm0, %v74_v27 }
 0x14f   :  { %v75_v29 = vadd.f32 %v96_v23, %v67_v28 }
 0x151   :  { %77 = vst.msk [vmem:[#allocation5 + $0x8] sm:$0xff] %vm33_vm0, %v75_v29 }
 0x152   :  { %138 = shalt.err (!%p135_p12)
}
 0x153   :  { %s139_s5 = scalar_lea.hbm %s222_s3, 256 }
 0x154   :  { %p140_p13 = scmp.ne.s32.totalorder %s222_s3, %s139_s5  ;;  %p143_p0 = scmp.lt.u32.totalorder %s139_s5, %s222_s3 }
 0x156   :  { %p145_p1 = pnand %p143_p0, %p140_p13 }
 0x158   :  { %148 = shalt.err (!%p145_p1)
}
 0x159   :  { %89 = dma.vmem_to_hbm [thread:$0]  %s84_s30, 256, %s222_s3, [#allocation4], %s154_s22, %s154_s22, %s155_s23  }
 0x15a   :  { %151 = dma.done.wait [#allocation4], 256  }
 0x15b   :  { %152 = vsyncadd [#allocation4], 4294967040 }
 0x15c   :  { %93 = vsyncpa [#allocation3], 1 }
 0x15d   :  { %94 = vsyncpa [#allocation4], 1 }

</bundles_post_ra>
